<compile_context>
chip_gen: v5e
topology: v5e:2x2
jax: 0.10.0
libtpu: 0.0.40
codegen_flags: <defaults>
</compile_context>

<pallas_src>
import functools

import jax
import jax.numpy as jnp
from jax.experimental import pallas as pl
from jax.experimental.pallas import tpu as pltpu


def _round_up(n, m):
    return ((n + m - 1) // m) * m


def actor_kernel(x_ref, w1_ref, b1_ref, w2_ref, b2_ref, w3_ref, b3_ref, o_ref):
    x = x_ref[...]

    # fc1 + ReLU (f32 accumulation on the MXU; Mosaic pads K=state_dim internally)
    h1 = jnp.maximum(
        jnp.dot(x, w1_ref[...], preferred_element_type=jnp.float32) + b1_ref[...], 0.0)

    # fc2 + ReLU
    h2 = jnp.maximum(
        jnp.dot(h1, w2_ref[...], preferred_element_type=jnp.float32) + b2_ref[...], 0.0)

    # action head (padded to 128 lanes; padded columns carry bias = -1e30)
    logits = jnp.dot(h2, w3_ref[...], preferred_element_type=jnp.float32) + b3_ref[...]

    # numerically-stable softmax; padded columns contribute exp(-1e30 - m) == 0.
    m = jnp.max(logits, axis=-1, keepdims=True)
    e = jnp.exp(logits - m)
    denom = jnp.sum(e, axis=-1, keepdims=True)
    # Exact divide -> rows sum to 1 to f32 precision (approx reciprocal did not).
    o_ref[...] = (e / denom).astype(o_ref.dtype)


def prepare_params(params):
    """One-time layout preparation. Call once, reuse across forwards.

    params: (w1, b1, w2, b2, w3, b3) with weights stored as
            (in_features, out_features) and biases as (out_features,) or (1, out).
    Returns (w1, b1, w2, b2, w3_padded, b3_padded) ready for actor_forward.
    """
    w1, b1, w2, b2, w3, b3 = params
    h1_dim = w1.shape[1]            # 64
    h2_dim = w2.shape[1]            # 128
    action_dim = w3.shape[1]
    a_pad = _round_up(max(action_dim, 128), 128)   # lane-dense action head

    w1p = w1.astype(jnp.float32)
    b1p = b1.reshape(1, h1_dim).astype(jnp.float32)
    w2p = w2.astype(jnp.float32)
    b2p = b2.reshape(1, h2_dim).astype(jnp.float32)
    w3p = jnp.zeros((h2_dim, a_pad), jnp.float32).at[:, :action_dim].set(
        w3.astype(jnp.float32))
    # Padded logits get a huge negative bias -> exp() == 0 -> excluded from softmax.
    b3p = jnp.full((1, a_pad), -1e30, jnp.float32).at[0, :action_dim].set(
        b3.reshape(-1).astype(jnp.float32))
    return (w1p, b1p, w2p, b2p, w3p, b3p)


def actor_forward(x, prepped, *, action_dim, block_batch=512, return_padded=False):
    """x: (B, state_dim) f32. prepped: output of prepare_params()."""
    w1, b1, w2, b2, w3p, b3p = prepped
    state_dim = w1.shape[0]
    h1_dim = w1.shape[1]
    h2_dim = w2.shape[1]
    a_pad = w3p.shape[1]
    B = x.shape[0]

    # Big batch tile (per-grid-step overhead dominates here), but keep the grid
    # length >= 2 when possible so both v7x TensorCores get a share.
    TB = min(block_batch, max(8, _round_up(pl.cdiv(B, 2), 8)))
    grid = (pl.cdiv(B, TB),)

    flops = 2 * B * (state_dim * h1_dim + h1_dim * h2_dim + h2_dim * a_pad)
    bytes_accessed = 4 * (
        B * state_dim + B * a_pad                              # batch-scaled I/O
        + state_dim * h1_dim + h1_dim + h1_dim * h2_dim + h2_dim  # resident weights
        + h2_dim * a_pad + a_pad)

    out = pl.pallas_call(
        actor_kernel,
        out_shape=jax.ShapeDtypeStruct((B, a_pad), jnp.float32),
        grid_spec=pltpu.PrefetchScalarGridSpec(
            num_scalar_prefetch=0,
            grid=grid,
            in_specs=[
                pl.BlockSpec((TB, state_dim), lambda i: (i, 0)),       # x tile
                pl.BlockSpec((state_dim, h1_dim), lambda i: (0, 0)),   # w1 (resident)
                pl.BlockSpec((1, h1_dim), lambda i: (0, 0)),           # b1
                pl.BlockSpec((h1_dim, h2_dim), lambda i: (0, 0)),      # w2
                pl.BlockSpec((1, h2_dim), lambda i: (0, 0)),           # b2
                pl.BlockSpec((h2_dim, a_pad), lambda i: (0, 0)),       # w3 (padded)
                pl.BlockSpec((1, a_pad), lambda i: (0, 0)),            # b3 (padded)
            ],
            out_specs=pl.BlockSpec((TB, a_pad), lambda i: (i, 0)),     # lane-dense out
        ),
        compiler_params=pltpu.CompilerParams(
            dimension_semantics=("parallel",),
        ),
        cost_estimate=pl.CostEstimate(
            flops=flops,
            transcendentals=B * a_pad,
            bytes_accessed=bytes_accessed,
        ),
    )(x.astype(jnp.float32), w1, b1, w2, b2, w3p, b3p)

    if return_padded:
        return out            # (B, 128): consumers can index lanes [:action_dim]
    return out[:, :action_dim]


def init_params(key, state_dim, action_dim):
    k1, k2, k3, k4, k5, k6 = jax.random.split(key, 6)

    # Deterministic synthetic init (uniform, scaled like PyTorch's fan-in init).
    def lin(kw, kb, fan_in, fan_out):
        bound = 1.0 / jnp.sqrt(fan_in)
        w = jax.random.uniform(kw, (fan_in, fan_out), jnp.float32, -bound, bound)
        b = jax.random.uniform(kb, (1, fan_out), jnp.float32, -bound, bound)
        return w, b

    w1, b1 = lin(k1, k2, state_dim, 64)
    w2, b2 = lin(k3, k4, 64, 128)
    w3, b3 = lin(k5, k6, 128, action_dim)
    return (w1, b1, w2, b2, w3, b3)


def reference_forward(x, params):
    w1, b1, w2, b2, w3, b3 = params
    h1 = jax.nn.relu(x @ w1 + b1)
    h2 = jax.nn.relu(h1 @ w2 + b2)
    return jax.nn.softmax(h2 @ w3 + b3, axis=-1)


if __name__ == "__main__":
    state_dim, action_dim = 4, 2          # CartPole-like dims
    batch = 256
    key = jax.random.PRNGKey(0)
    kx, kp = jax.random.split(key)

    x = jax.random.normal(kx, (batch, state_dim), jnp.float32)
    params = init_params(kp, state_dim, action_dim)
    prepped = prepare_params(params)      # one-time layout prep (not per call)

    fwd = jax.jit(functools.partial(actor_forward, action_dim=action_dim))
    out = jax.block_until_ready(fwd(x, prepped))

    ref = reference_forward(x, params)
    assert out.shape == (batch, action_dim)
    assert jnp.allclose(out, ref, atol=1e-3, rtol=1e-3), "mismatch vs reference"
    # exact divide -> rows sum to 1 to f32 precision
    assert jnp.allclose(jnp.sum(out, axis=-1), 1.0, atol=1e-5), \
        "softmax rows must sum to 1"

    # small-batch (single-grid-step) path
    out_small = jax.block_until_ready(fwd(x[:8], prepped))
    assert out_small.shape == (8, action_dim)
    assert jnp.allclose(out_small, ref[:8], atol=1e-3, rtol=1e-3)
    assert jnp.allclose(jnp.sum(out_small, axis=-1), 1.0, atol=1e-5)

    print("KERNEL_OK")
</pallas_src>

<mosaic_0001>
module attributes {stable_mosaic.version = 11 : i64} {
  func.func @actor_kernel(%arg0: i32, %arg1: memref<128x4xf32, #tpu.memory_space<vmem>>, %arg2: memref<4x64xf32, #tpu.memory_space<vmem>>, %arg3: memref<1x64xf32, #tpu.memory_space<vmem>>, %arg4: memref<64x128xf32, #tpu.memory_space<vmem>>, %arg5: memref<1x128xf32, #tpu.memory_space<vmem>>, %arg6: memref<128x128xf32, #tpu.memory_space<vmem>>, %arg7: memref<1x128xf32, #tpu.memory_space<vmem>>, %arg8: memref<128x128xf32, #tpu.memory_space<vmem>>) attributes {dimension_semantics = [#tpu.dimension_semantics<parallel>], iteration_bounds = array<i64: 2>, scalar_prefetch = 0 : i64, scratch_operands = 0 : i64, tpu.core_type = #tpu.core_type<tc>, window_params = [{transform_indices = @transform_0, window_bounds = array<i64: 128, 4>}, {pipeline_mode = #tpu.pipeline_mode<synchronous>, transform_indices = @transform_1, window_bounds = array<i64: 4, 64>}, {pipeline_mode = #tpu.pipeline_mode<synchronous>, transform_indices = @transform_2, window_bounds = array<i64: 1, 64>}, {pipeline_mode = #tpu.pipeline_mode<synchronous>, transform_indices = @transform_3, window_bounds = array<i64: 64, 128>}, {pipeline_mode = #tpu.pipeline_mode<synchronous>, transform_indices = @transform_4, window_bounds = array<i64: 1, 128>}, {pipeline_mode = #tpu.pipeline_mode<synchronous>, transform_indices = @transform_5, window_bounds = array<i64: 128, 128>}, {pipeline_mode = #tpu.pipeline_mode<synchronous>, transform_indices = @transform_6, window_bounds = array<i64: 1, 128>}, {transform_indices = @transform_7, window_bounds = array<i64: 128, 128>}]} {
    %c0 = arith.constant 0 : index
    %c0_0 = arith.constant 0 : index
    %0 = vector.load %arg1[%c0, %c0_0] : memref<128x4xf32, #tpu.memory_space<vmem>>, vector<128x4xf32>
    %c0_1 = arith.constant 0 : index
    %c0_2 = arith.constant 0 : index
    %1 = vector.load %arg2[%c0_1, %c0_2] : memref<4x64xf32, #tpu.memory_space<vmem>>, vector<4x64xf32>
    %cst = arith.constant dense<0.000000e+00> : vector<128x64xf32>
    %2 = tpu.matmul %0, %1, %cst {dimension_numbers = #tpu.dot_dimension_numbers<[1], [0], [0], [1], [0, 0, 1, 1], [], []>} : vector<128x4xf32>, vector<4x64xf32>, vector<128x64xf32> -> vector<128x64xf32>
    %c0_3 = arith.constant 0 : index
    %c0_4 = arith.constant 0 : index
    %3 = vector.load %arg3[%c0_3, %c0_4] : memref<1x64xf32, #tpu.memory_space<vmem>>, vector<1x64xf32>
    %4 = vector.broadcast %3 : vector<1x64xf32> to vector<128x64xf32>
    %5 = arith.addf %2, %4 : vector<128x64xf32>
    %cst_5 = arith.constant 0.000000e+00 : f32
    %6 = vector.broadcast %cst_5 : f32 to vector<128x64xf32>
    %7 = arith.maximumf %5, %6 : vector<128x64xf32>
    %c0_6 = arith.constant 0 : index
    %c0_7 = arith.constant 0 : index
    %8 = vector.load %arg4[%c0_6, %c0_7] : memref<64x128xf32, #tpu.memory_space<vmem>>, vector<64x128xf32>
    %cst_8 = arith.constant dense<0.000000e+00> : vector<128x128xf32>
    %9 = tpu.matmul %7, %8, %cst_8 {dimension_numbers = #tpu.dot_dimension_numbers<[1], [0], [0], [1], [0, 0, 1, 1], [], []>} : vector<128x64xf32>, vector<64x128xf32>, vector<128x128xf32> -> vector<128x128xf32>
    %c0_9 = arith.constant 0 : index
    %c0_10 = arith.constant 0 : index
    %10 = vector.load %arg5[%c0_9, %c0_10] : memref<1x128xf32, #tpu.memory_space<vmem>>, vector<1x128xf32>
    %11 = vector.broadcast %10 : vector<1x128xf32> to vector<128x128xf32>
    %12 = arith.addf %9, %11 : vector<128x128xf32>
    %cst_11 = arith.constant 0.000000e+00 : f32
    %13 = vector.broadcast %cst_11 : f32 to vector<128x128xf32>
    %14 = arith.maximumf %12, %13 : vector<128x128xf32>
    %c0_12 = arith.constant 0 : index
    %c0_13 = arith.constant 0 : index
    %15 = vector.load %arg6[%c0_12, %c0_13] : memref<128x128xf32, #tpu.memory_space<vmem>>, vector<128x128xf32>
    %cst_14 = arith.constant dense<0.000000e+00> : vector<128x128xf32>
    %16 = tpu.matmul %14, %15, %cst_14 {dimension_numbers = #tpu.dot_dimension_numbers<[1], [0], [0], [1], [0, 0, 1, 1], [], []>} : vector<128x128xf32>, vector<128x128xf32>, vector<128x128xf32> -> vector<128x128xf32>
    %c0_15 = arith.constant 0 : index
    %c0_16 = arith.constant 0 : index
    %17 = vector.load %arg7[%c0_15, %c0_16] : memref<1x128xf32, #tpu.memory_space<vmem>>, vector<1x128xf32>
    %18 = vector.broadcast %17 : vector<1x128xf32> to vector<128x128xf32>
    %19 = arith.addf %16, %18 : vector<128x128xf32>
    %cst_17 = arith.constant dense<0xFF800000> : vector<128xf32>
    %20 = vector.multi_reduction <maximumf>, %19, %cst_17 [1] : vector<128x128xf32> to vector<128xf32>
    %21 = vector.shape_cast %20 : vector<128xf32> to vector<128x1xf32>
    %22 = vector.broadcast %21 : vector<128x1xf32> to vector<128x128xf32>
    %23 = arith.subf %19, %22 : vector<128x128xf32>
    %24 = math.exp %23 : vector<128x128xf32>
    %cst_18 = arith.constant dense<0.000000e+00> : vector<128xf32>
    %25 = vector.multi_reduction <add>, %24, %cst_18 [1] : vector<128x128xf32> to vector<128xf32>
    %26 = vector.shape_cast %25 : vector<128xf32> to vector<128x1xf32>
    %27 = vector.broadcast %26 : vector<128x1xf32> to vector<128x128xf32>
    %28 = arith.divf %24, %27 : vector<128x128xf32>
    %c0_19 = arith.constant 0 : index
    %c0_20 = arith.constant 0 : index
    %29 = vector.load %arg8[%c0_19, %c0_20] : memref<128x128xf32, #tpu.memory_space<vmem>>, vector<128x128xf32>
    tpu.vector_store %arg8[%c0_19, %c0_20], %28 {strides = array<i32>} : memref<128x128xf32, #tpu.memory_space<vmem>>, vector<128x128xf32>,
    return
  }
  func.func @transform_0(%arg0: i32) -> (i32, i32) {
    %c0_i32 = arith.constant 0 : i32
    %c0_i32_0 = arith.constant 0 : i32
    return %arg0, %c0_i32 : i32, i32
  }
  func.func @transform_1(%arg0: i32) -> (i32, i32) {
    %c0_i32 = arith.constant 0 : i32
    %c0_i32_0 = arith.constant 0 : i32
    %c0_i32_1 = arith.constant 0 : i32
    return %c0_i32, %c0_i32_0 : i32, i32
  }
  func.func @transform_2(%arg0: i32) -> (i32, i32) {
    %c0_i32 = arith.constant 0 : i32
    %c0_i32_0 = arith.constant 0 : i32
    %c0_i32_1 = arith.constant 0 : i32
    return %c0_i32, %c0_i32_0 : i32, i32
  }
  func.func @transform_3(%arg0: i32) -> (i32, i32) {
    %c0_i32 = arith.constant 0 : i32
    %c0_i32_0 = arith.constant 0 : i32
    %c0_i32_1 = arith.constant 0 : i32
    return %c0_i32, %c0_i32_0 : i32, i32
  }
  func.func @transform_4(%arg0: i32) -> (i32, i32) {
    %c0_i32 = arith.constant 0 : i32
    %c0_i32_0 = arith.constant 0 : i32
    %c0_i32_1 = arith.constant 0 : i32
    return %c0_i32, %c0_i32_0 : i32, i32
  }
  func.func @transform_5(%arg0: i32) -> (i32, i32) {
    %c0_i32 = arith.constant 0 : i32
    %c0_i32_0 = arith.constant 0 : i32
    %c0_i32_1 = arith.constant 0 : i32
    return %c0_i32, %c0_i32_0 : i32, i32
  }
  func.func @transform_6(%arg0: i32) -> (i32, i32) {
    %c0_i32 = arith.constant 0 : i32
    %c0_i32_0 = arith.constant 0 : i32
    %c0_i32_1 = arith.constant 0 : i32
    return %c0_i32, %c0_i32_0 : i32, i32
  }
  func.func @transform_7(%arg0: i32) -> (i32, i32) {
    %c0_i32 = arith.constant 0 : i32
    %c0_i32_0 = arith.constant 0 : i32
    return %arg0, %c0_i32 : i32, i32
  }
}

</mosaic_0001>

<bundles_post_ra>
// kernel: actor_forward.1
= control target key start
LH: loop header
LB: loop body
LE: loop exit
PB: predicated region body
PF: predicated region fallthrough
CT: control target
= control target key end

     0   :  { %s1280_s24 = smov 0   ;;  %s1582_s0 = inlined_call_operand.vmem [shape: f32[256,4], index: 0, kind: input, shape index: {}]   ;;  %s1583_s1 = inlined_call_operand.vmem [shape: f32[4,64], index: 1, kind: input, shape index: {}]   ;;  %s1584_s2 = inlined_call_operand.vmem [shape: f32[1,64], index: 2, kind: input, shape index: {}]   ;;  %s1585_s3 = inlined_call_operand.vmem [shape: f32[64,128], index: 3, kind: input, shape index: {}]   ;;  %s1586_s4 = inlined_call_operand.vmem [shape: f32[1,128], index: 4, kind: input, shape index: {}]   ;;  %s1587_s5 = inlined_call_operand.vmem [shape: f32[128,128], index: 5, kind: input, shape index: {}]   ;;  %s1588_s6 = inlined_call_operand.vmem [shape: f32[1,128], index: 6, kind: input, shape index: {}]   ;;  %s1589_s7 = inlined_call_operand.vmem [shape: f32[256,128], index: 7, kind: output, shape index: {}]  }
   0x1 LB: > { %s1088_s25 = sadd.s32 4294967295, %s1238_s24   ;;  %p1092_p0 = scmp.ge.s32.totalorder %s1238_s24, 1  ;;  %s1238_s24 = sphi %s1280_s24, %s17_s24  }
   0x2   : > { %p238_p1 = scmp.lt.s32.totalorder %s1238_s24, 3 }
   0x4   : > { %p239_p2 = pnand %p1092_p0, %p238_p1 }
   0x5   : > { %s1093_s28 = sshll.u32 (!%p239_p2), %s1088_s25, 4 }
   0x6   : > { %242 = sbr.rel (%p239_p2) target bundleno = 798 (0x31e), region = 48  ;;  %p271_p3 = scmp.lt.s32.totalorder (!%p239_p2), %s1093_s28, 31 }
   0xb   : > { %v298_v0 = vld [vmem:[%s1583_s1] sm:$0xf]  ;;  %vm352_vm0 = vcmask 1043456   ;;  %s1591_s28 = smov (!%p271_p3, %s1093_s28), 31  ;;  %vm303_vm1 = vcmask 31744   ;;  %v444_v12 = vld [vmem:[%s1585_s3 + $0x38] sm:$0xff] }
   0xc   : > { %1097 = vmatpush.msk.msra.mxu0 %vm352_vm0, %v298_v0  ;;  %1132 = vmatpush.msk.msra.mxu3 %vm352_vm0, %v298_v0  ;;  %s1094_s29 = sshll.u32 %s1591_s28, 3  ;;  %v443_v13 = vld [vmem:[%s1585_s3 + $0x30] sm:$0xff]  ;;  %v442_v14 = vld [vmem:[%s1585_s3 + $0x28] sm:$0xff]  ;;  %v441_v15 = vld [vmem:[%s1585_s3 + $0x20] sm:$0xff]  ;;  %vm449_vm2 = vcmask 523264  }
   0xd   : > { %s1299_s9 = scalar_lea.vmem %s1582_s0, %s1094_s29  ;;  %506 = vmatpush.msra.mxu1 %v444_v12  ;;  %v440_v18 = vld [vmem:[%s1585_s3 + $0x18] sm:$0xff]  ;;  %v439_v20 = vld [vmem:[%s1585_s3 + $0x10] sm:$0xff]  ;;  %v438_v22 = vld [vmem:[%s1585_s3 + $0x8] sm:$0xff]  ;;  %s1545_s27 = scalar_lea.vmem %s1589_s7, %s1094_s29 }
   0xe   : > { %v282_v1 = vld [vmem:[%s1299_s9] sm:$0xff]  ;;  %v283_v2 = vld [vmem:[%s1299_s9 + $0x8] sm:$0xff]  ;;  %v284_v3 = vld [vmem:[%s1299_s9 + $0x10] sm:$0xff]  ;;  %1133 = vmatpush.msrb.mxu3 %v444_v12 }
   0xf   : > { %1098 = vmatmul.msk.f32.vlgmr.msra.gmra.mxu0 %vm303_vm1, %v282_v1  ;;  %v285_v4 = vld [vmem:[%s1299_s9 + $0x18] sm:$0xff]  ;;  %v286_v5 = vld [vmem:[%s1299_s9 + $0x20] sm:$0xff]  ;;  %v287_v6 = vld [vmem:[%s1299_s9 + $0x28] sm:$0xff]  ;;  %507 = vmatpush.msra.mxu1 %v443_v13 }
  0x10   : > { %v288_v7 = vld [vmem:[%s1299_s9 + $0x30] sm:$0xff]  ;;  %v289_v8 = vld [vmem:[%s1299_s9 + $0x38] sm:$0xff]  ;;  %v290_v9 = vld [vmem:[%s1299_s9 + $0x40] sm:$0xff]  ;;  %1134 = vmatpush.msrb.mxu3 %v443_v13 }
  0x11   : > { %v291_v10 = vld [vmem:[%s1299_s9 + $0x48] sm:$0xff]  ;;  %v296_v11 = vld [vmem:[%s1299_s9 + $0x70] sm:$0xff]  ;;  %508 = vmatpush.msra.mxu1 %v442_v14  ;;  %v297_v17 = vld [vmem:[%s1299_s9 + $0x78] sm:$0xff] }
  0x12   : > { %1112 = vmatmul.msk.f32.vlgmr.msra.gmra.mxu3 %vm303_vm1, %v296_v11  ;;  %v292_v16 = vld [vmem:[%s1299_s9 + $0x50] sm:$0xff]  ;;  %v293_v19 = vld [vmem:[%s1299_s9 + $0x58] sm:$0xff]  ;;  %v294_v21 = vld [vmem:[%s1299_s9 + $0x60] sm:$0xff] }
  0x13   : > { %1135 = vmatpush.msrb.mxu3 %v442_v14  ;;  %509 = vmatpush.msra.mxu1 %v441_v15  ;;  %v437_v23 = vld [vmem:[%s1585_s3] sm:$0xff]  ;;  %v295_v24 = vld [vmem:[%s1299_s9 + $0x68] sm:$0xff]  ;;  %v594_v53 = vld [vmem:[%s1587_s5 + $0x78] sm:$0xff] }
  0x14   : > { %v1360_v25 = vld [vmem:[%s1584_s2] ss:$0 sm:$0xff]  ;;  %599 = vmatpush.msra.mxu2 %v594_v53  ;;  %v593_v56 = vld [vmem:[%s1587_s5 + $0x70] sm:$0xff]  ;;  %v592_v58 = vld [vmem:[%s1587_s5 + $0x68] sm:$0xff] }
  0x15   : > { %1136 = vmatpush.msrb.mxu3 %v441_v15  ;;  %510 = vmatpush.msra.mxu1 %v440_v18  ;;  %v591_v59 = vld [vmem:[%s1587_s5 + $0x60] sm:$0xff]  ;;  %v590_v60 = vld [vmem:[%s1587_s5 + $0x58] sm:$0xff]  ;;  %v589_v61 = vld [vmem:[%s1587_s5 + $0x50] sm:$0xff] }
  0x16   : > { %600 = vmatpush.msra.mxu2 %v593_v56  ;;  %v588_v0 = vld [vmem:[%s1587_s5 + $0x48] sm:$0xff]  ;;  %v581_v13 = vld [vmem:[%s1587_s5 + $0x10] sm:$0xff] }
  0x17   : > { %1099 = vmatmul.msk.f32.gmra.mxu0 %vm303_vm1, %v283_v2  ;;  %1137 = vmatpush.msrb.mxu3 %v440_v18  ;;  %v587_v2 = vld [vmem:[%s1587_s5 + $0x40] sm:$0xff]  ;;  %v580_v15 = vld [vmem:[%s1587_s5 + $0x8] sm:$0xff] }
  0x18   : > { %511 = vmatpush.msra.mxu1 %v439_v20  ;;  %601 = vmatpush.msra.mxu2 %v592_v58 }
  0x19   : > { %1138 = vmatpush.msrb.mxu3 %v439_v20 }
  0x1a   : > { %1113 = vmatmul.msk.f32.gmra.mxu3 %vm303_vm1, %v297_v17  ;;  %512 = vmatpush.msra.mxu1 %v438_v22 }
  0x1b   : > { %1139 = vmatpush.msrb.mxu3 %v438_v22  ;;  %602 = vmatpush.msra.mxu2 %v591_v59 }
  0x1c   : > { %513 = vmatpush.msra.mxu1 %v437_v23 }
  0x1d   : > { %1140 = vmatpush.msrb.mxu3 %v437_v23  ;;  %603 = vmatpush.msra.mxu2 %v590_v60 }
  0x1f   : > { %1100 = vmatmul.msk.f32.gmra.mxu0 %vm303_vm1, %v284_v3  ;;  %1141 = vmatpush.msra.mxu3 %v594_v53  ;;  %v586_v3 = vld [vmem:[%s1587_s5 + $0x38] sm:$0xff] }
  0x20   : > { %604 = vmatpush.msra.mxu2 %v589_v61 }
  0x21   : > { %1142 = vmatpush.msra.mxu3 %v593_v56 }
  0x22   : > { %605 = vmatpush.msra.mxu2 %v588_v0 }
  0x23   : > { %1143 = vmatpush.msra.mxu3 %v592_v58 }
  0x24   : > { %606 = vmatpush.msra.mxu2 %v587_v2 }
  0x25   : > { %1144 = vmatpush.msra.mxu3 %v591_v59 }
  0x26   : > { %607 = vmatpush.msra.mxu2 %v586_v3 }
  0x27   : > { %1101 = vmatmul.msk.f32.gmra.mxu0 %vm303_vm1, %v285_v4  ;;  %1145 = vmatpush.msra.mxu3 %v590_v60  ;;  %v585_v4 = vld [vmem:[%s1587_s5 + $0x30] sm:$0xff] }
  0x28   : > { %608 = vmatpush.msra.mxu2 %v585_v4 }
  0x29   : > { %1146 = vmatpush.msra.mxu3 %v589_v61 }
  0x2b   : > { %1147 = vmatpush.msra.mxu3 %v588_v0 }
  0x2d   : > { %1148 = vmatpush.msra.mxu3 %v587_v2 }
  0x2f   : > { %1102 = vmatmul.msk.f32.gmra.mxu0 %vm303_vm1, %v286_v5  ;;  %1149 = vmatpush.msra.mxu3 %v586_v3 }
  0x31   : > { %1150 = vmatpush.msra.mxu3 %v585_v4 }
  0x37   : > { %1103 = vmatmul.msk.f32.gmra.mxu0 %vm303_vm1, %v287_v6 }
  0x3f   : > { %1104 = vmatmul.msk.f32.gmra.mxu0 %vm303_vm1, %v288_v7  ;;  %v584_v7 = vld [vmem:[%s1587_s5 + $0x28] sm:$0xff] }
  0x40   : > { %609 = vmatpush.msra.mxu2 %v584_v7  ;;  %1151 = vmatpush.msra.mxu3 %v584_v7 }
  0x47   : > { %1105 = vmatmul.msk.f32.gmra.mxu0 %vm303_vm1, %v289_v8 }
  0x4f   : > { %1106 = vmatmul.msk.f32.gmra.mxu0 %vm303_vm1, %v290_v9  ;;  %v583_v9 = vld [vmem:[%s1587_s5 + $0x20] sm:$0xff] }
  0x50   : > { %610 = vmatpush.msra.mxu2 %v583_v9  ;;  %1152 = vmatpush.msra.mxu3 %v583_v9 }
  0x57   : > { %1107 = vmatmul.msk.f32.gmra.mxu0 %vm303_vm1, %v291_v10  ;;  %v582_v10 = vld [vmem:[%s1587_s5 + $0x18] sm:$0xff] }
  0x58   : > { %611 = vmatpush.msra.mxu2 %v582_v10  ;;  %1153 = vmatpush.msra.mxu3 %v582_v10 }
  0x5a   : > { %612 = vmatpush.msra.mxu2 %v581_v13  ;;  %1154 = vmatpush.msra.mxu3 %v581_v13 }
  0x5c   : > { %613 = vmatpush.msra.mxu2 %v580_v15  ;;  %1155 = vmatpush.msra.mxu3 %v580_v15 }
  0x5f   : > { %1108 = vmatmul.msk.f32.gmra.mxu0 %vm303_vm1, %v292_v16  ;;  %v579_v16 = vld [vmem:[%s1587_s5] sm:$0xff] }
  0x60   : > { %614 = vmatpush.msra.mxu2 %v579_v16  ;;  %1156 = vmatpush.msra.mxu3 %v579_v16 }
  0x67   : > { %1109 = vmatmul.msk.f32.gmra.mxu0 %vm303_vm1, %v293_v19 }
  0x6f   : > { %1110 = vmatmul.msk.f32.gmra.mxu0 %vm303_vm1, %v294_v21 }
  0x77   : > { %1111 = vmatmul.msk.f32.gmra.mxu0 %vm303_vm1, %v295_v24 }
  0x8c   : > { %v373_v26 = vpop.f32.mrf.mxu0 }
  0x8d   : > { %v374_v27 = vadd.f32 %v1360_v25, %v373_v26 }
  0x8f   : > { %v421_v28 = vmax.f32 %v374_v27, 0.0  ;;  %v1166_v27 = vld [vmem:[%s1586_s4] ss:$0 sm:$0xff] }
  0x91   : > { %1114 = vmatmul.msk.f32.vlgmr.msra.gmra.mxu1 %vm449_vm2, %v421_v28 }
  0x94   : > { %v376_v29 = vpop.f32.mrf.mxu0 }
  0x95   : > { %v377_v30 = vadd.f32 %v1360_v25, %v376_v29  ;;  %v415_v18 = vpop.f32.mrf.mxu3 }
  0x96   : > { %v416_v21 = vadd.f32 %v1360_v25, %v415_v18 }
  0x97   : > { %v422_v31 = vmax.f32 %v377_v30, 0.0 }
  0x98   : > { %v435_v22 = vmax.f32 %v416_v21, 0.0 }
  0x99   : > { %1115 = vmatmul.msk.f32.gmra.mxu1 %vm449_vm2, %v422_v31 }
  0x9c   : > { %v379_v32 = vpop.f32.mrf.mxu0 }
  0x9d   : > { %v380_v33 = vadd.f32 %v1360_v25, %v379_v32  ;;  %v418_v23 = vpop.f32.mrf.mxu3 }
  0x9e   : > { %v419_v24 = vadd.f32 %v1360_v25, %v418_v23 }
  0x9f   : > { %v423_v34 = vmax.f32 %v380_v33, 0.0 }
  0xa0   : > { %v436_v26 = vmax.f32 %v419_v24, 0.0 }
  0xa1   : > { %1116 = vmatmul.msk.f32.gmra.mxu1 %vm449_vm2, %v423_v34 }
  0xa4   : > { %v382_v35 = vpop.f32.mrf.mxu0 }
  0xa5   : > { %v383_v36 = vadd.f32 %v1360_v25, %v382_v35 }
  0xa7   : > { %v424_v37 = vmax.f32 %v383_v36, 0.0 }
  0xa9   : > { %1117 = vmatmul.msk.f32.gmra.mxu1 %vm449_vm2, %v424_v37 }
  0xac   : > { %v385_v38 = vpop.f32.mrf.mxu0 }
  0xad   : > { %v386_v39 = vadd.f32 %v1360_v25, %v385_v38 }
  0xaf   : > { %v425_v40 = vmax.f32 %v386_v39, 0.0 }
  0xb1   : > { %1118 = vmatmul.msk.f32.gmra.mxu1 %vm449_vm2, %v425_v40 }
  0xb4   : > { %v388_v41 = vpop.f32.mrf.mxu0 }
  0xb5   : > { %v389_v42 = vadd.f32 %v1360_v25, %v388_v41 }
  0xb7   : > { %v426_v43 = vmax.f32 %v389_v42, 0.0 }
  0xb9   : > { %1119 = vmatmul.msk.f32.gmra.mxu1 %vm449_vm2, %v426_v43 }
  0xbc   : > { %v391_v44 = vpop.f32.mrf.mxu0 }
  0xbd   : > { %v392_v45 = vadd.f32 %v1360_v25, %v391_v44 }
  0xbf   : > { %v427_v46 = vmax.f32 %v392_v45, 0.0 }
  0xc1   : > { %1120 = vmatmul.msk.f32.gmra.mxu1 %vm449_vm2, %v427_v46 }
  0xc4   : > { %v394_v47 = vpop.f32.mrf.mxu0 }
  0xc5   : > { %v395_v48 = vadd.f32 %v1360_v25, %v394_v47 }
  0xc7   : > { %v428_v49 = vmax.f32 %v395_v48, 0.0 }
  0xc9   : > { %1121 = vmatmul.msk.f32.gmra.mxu1 %vm449_vm2, %v428_v49 }
  0xcc   : > { %v397_v50 = vpop.f32.mrf.mxu0 }
  0xcd   : > { %v398_v51 = vadd.f32 %v1360_v25, %v397_v50 }
  0xcf   : > { %v429_v52 = vmax.f32 %v398_v51, 0.0 }
  0xd1   : > { %1122 = vmatmul.msk.f32.gmra.mxu1 %vm449_vm2, %v429_v52 }
  0xd4   : > { %v400_v54 = vpop.f32.mrf.mxu0 }
  0xd5   : > { %v401_v55 = vadd.f32 %v1360_v25, %v400_v54 }
  0xd7   : > { %v430_v57 = vmax.f32 %v401_v55, 0.0 }
  0xd9   : > { %1123 = vmatmul.msk.f32.gmra.mxu1 %vm449_vm2, %v430_v57 }
  0xdc   : > { %v403_v62 = vpop.f32.mrf.mxu0 }
  0xdd   : > { %v404_v63 = vadd.f32 %v1360_v25, %v403_v62 }
  0xdf   : > { %v431_v1 = vmax.f32 %v404_v63, 0.0 }
  0xe1   : > { %1124 = vmatmul.msk.f32.gmra.mxu1 %vm449_vm2, %v431_v1 }
  0xe4   : > { %v406_v5 = vpop.f32.mrf.mxu0 }
  0xe5   : > { %v407_v6 = vadd.f32 %v1360_v25, %v406_v5 }
  0xe7   : > { %v432_v8 = vmax.f32 %v407_v6, 0.0 }
  0xe9   : > { %1125 = vmatmul.msk.f32.gmra.mxu1 %vm449_vm2, %v432_v8 }
  0xec   : > { %v409_v11 = vpop.f32.mrf.mxu0 }
  0xed   : > { %v410_v12 = vadd.f32 %v1360_v25, %v409_v11  ;;  %v1167_v11 = vld [vmem:[%s1588_s6] ss:$0 sm:$0xff] }
  0xef   : > { %v433_v14 = vmax.f32 %v410_v12, 0.0 }
  0xf1   : > { %1126 = vmatmul.msk.f32.vlgmr.msrb.gmra.mxu3 %vm449_vm2, %v433_v14 }
  0xf4   : > { %v412_v17 = vpop.f32.mrf.mxu0 }
  0xf5   : > { %v413_v19 = vadd.f32 %v1360_v25, %v412_v17 }
  0xf7   : > { %v434_v20 = vmax.f32 %v413_v19, 0.0 }
  0xf9   : > { %1127 = vmatmul.msk.f32.gmra.mxu3 %vm449_vm2, %v434_v20 }
 0x101   : > { %1128 = vmatmul.msk.f32.gmra.mxu3 %vm449_vm2, %v435_v22 }
 0x109   : > { %1129 = vmatmul.msk.f32.gmra.mxu3 %vm449_vm2, %v436_v26 }
 0x10e   : > { %v515_v28 = vpop.f32.mrf.mxu1 }
 0x10f   : > { %v516_v29 = vadd.f32 %v1166_v27, %v515_v28 }
 0x111   : > { %v563_v30 = vmax.f32 %v516_v29, 0.0 }
 0x113   : > { %615 = vmatmul.f32.vlgmr.msra.gmra.mxu2 %v563_v30 }
 0x116   : > { %v518_v31 = vpop.f32.mrf.mxu1 }
 0x117   : > { %v519_v32 = vadd.f32 %v1166_v27, %v518_v31 }
 0x119   : > { %v564_v33 = vmax.f32 %v519_v32, 0.0 }
 0x11b   : > { %618 = vmatmul.f32.gmra.mxu2 %v564_v33 }
 0x11e   : > { %v521_v34 = vpop.f32.mrf.mxu1 }
 0x11f   : > { %v522_v35 = vadd.f32 %v1166_v27, %v521_v34 }
 0x121   : > { %v565_v36 = vmax.f32 %v522_v35, 0.0 }
 0x123   : > { %621 = vmatmul.f32.gmra.mxu2 %v565_v36 }
 0x126   : > { %v524_v25 = vpop.f32.mrf.mxu1 }
 0x127   : > { %v525_v37 = vadd.f32 %v1166_v27, %v524_v25 }
 0x129   : > { %v566_v38 = vmax.f32 %v525_v37, 0.0 }
 0x12b   : > { %624 = vmatmul.f32.gmra.mxu2 %v566_v38 }
 0x12e   : > { %v527_v39 = vpop.f32.mrf.mxu1 }
 0x12f   : > { %v528_v40 = vadd.f32 %v1166_v27, %v527_v39 }
 0x131   : > { %v567_v41 = vmax.f32 %v528_v40, 0.0 }
 0x133   : > { %627 = vmatmul.f32.gmra.mxu2 %v567_v41 }
 0x136   : > { %v530_v42 = vpop.f32.mrf.mxu1 }
 0x137   : > { %v531_v43 = vadd.f32 %v1166_v27, %v530_v42 }
 0x139   : > { %v568_v44 = vmax.f32 %v531_v43, 0.0 }
 0x13b   : > { %630 = vmatmul.f32.gmra.mxu2 %v568_v44 }
 0x13e   : > { %v533_v45 = vpop.f32.mrf.mxu1 }
 0x13f   : > { %v534_v46 = vadd.f32 %v1166_v27, %v533_v45 }
 0x141   : > { %v569_v47 = vmax.f32 %v534_v46, 0.0 }
 0x143   : > { %633 = vmatmul.f32.gmra.mxu2 %v569_v47 }
 0x146   : > { %v536_v48 = vpop.f32.mrf.mxu1 }
 0x147   : > { %v537_v49 = vadd.f32 %v1166_v27, %v536_v48 }
 0x149   : > { %v570_v50 = vmax.f32 %v537_v49, 0.0 }
 0x14b   : > { %636 = vmatmul.f32.gmra.mxu2 %v570_v50 }
 0x14e   : > { %v539_v51 = vpop.f32.mrf.mxu1 }
 0x14f   : > { %v540_v52 = vadd.f32 %v1166_v27, %v539_v51 }
 0x151   : > { %v571_v53 = vmax.f32 %v540_v52, 0.0 }
 0x153   : > { %639 = vmatmul.f32.gmra.mxu2 %v571_v53 }
 0x156   : > { %v542_v54 = vpop.f32.mrf.mxu1 }
 0x157   : > { %v543_v55 = vadd.f32 %v1166_v27, %v542_v54 }
 0x159   : > { %v572_v56 = vmax.f32 %v543_v55, 0.0 }
 0x15b   : > { %642 = vmatmul.f32.gmra.mxu2 %v572_v56 }
 0x15e   : > { %v545_v57 = vpop.f32.mrf.mxu1 }
 0x15f   : > { %v546_v58 = vadd.f32 %v1166_v27, %v545_v57 }
 0x161   : > { %v573_v59 = vmax.f32 %v546_v58, 0.0 }
 0x163   : > { %645 = vmatmul.f32.vlgmr.msra.gmra.mxu3 %v573_v59 }
 0x166   : > { %v548_v60 = vpop.f32.mrf.mxu1 }
 0x167   : > { %v549_v61 = vadd.f32 %v1166_v27, %v548_v60 }
 0x169   : > { %v574_v62 = vmax.f32 %v549_v61, 0.0 }
 0x16b   : > { %648 = vmatmul.f32.gmra.mxu3 %v574_v62 }
 0x174   : > { %v551_v63 = vpop.f32.mrf.mxu3 }
 0x175   : > { %v552_v0 = vadd.f32 %v1166_v27, %v551_v63 }
 0x177   : > { %v575_v1 = vmax.f32 %v552_v0, 0.0 }
 0x179   : > { %651 = vmatmul.f32.gmra.mxu3 %v575_v1 }
 0x17c   : > { %v554_v2 = vpop.f32.mrf.mxu3 }
 0x17d   : > { %v555_v3 = vadd.f32 %v1166_v27, %v554_v2 }
 0x17f   : > { %v576_v4 = vmax.f32 %v555_v3, 0.0 }
 0x181   : > { %654 = vmatmul.f32.gmra.mxu3 %v576_v4 }
 0x184   : > { %v557_v5 = vpop.f32.mrf.mxu3 }
 0x185   : > { %v558_v6 = vadd.f32 %v1166_v27, %v557_v5 }
 0x187   : > { %v577_v7 = vmax.f32 %v558_v6, 0.0 }
 0x189   : > { %657 = vmatmul.f32.gmra.mxu3 %v577_v7 }
 0x18c   : > { %v560_v8 = vpop.f32.mrf.mxu3 }
 0x18d   : > { %v561_v9 = vadd.f32 %v1166_v27, %v560_v8 }
 0x18f   : > { %v578_v10 = vmax.f32 %v561_v9, 0.0 }
 0x191   : > { %660 = vmatmul.f32.gmra.mxu3 %v578_v10 }
 0x196   : > { %v616_v12 = vpop.f32.mrf.mxu2 }
 0x197   : > { %v617_v13 = vadd.f32 %v1167_v11, %v616_v12 }
 0x199   : > { %664 = vmax.xlane.f32.xlu0 %v617_v13 }
 0x19e   : > { %v619_v14 = vpop.f32.mrf.mxu2 }
 0x19f   : > { %v620_v15 = vadd.f32 %v1167_v11, %v619_v14 }
 0x1a1   : > { %666 = vmax.xlane.f32.xlu0 %v620_v15 }
 0x1a6   : > { %v622_v16 = vpop.f32.mrf.mxu2 }
 0x1a7   : > { %v623_v17 = vadd.f32 %v1167_v11, %v622_v16 }
 0x1a9   : > { %668 = vmax.xlane.f32.xlu1 %v623_v17 }
 0x1ae   : > { %v625_v18 = vpop.f32.mrf.mxu2 }
 0x1af   : > { %v626_v19 = vadd.f32 %v1167_v11, %v625_v18 }
 0x1b1   : > { %670 = vmax.xlane.f32.xlu1 %v626_v19 }
 0x1b6   : > { %v628_v20 = vpop.f32.mrf.mxu2 }
 0x1b7   : > { %v629_v21 = vadd.f32 %v1167_v11, %v628_v20 }
 0x1b9   : > { %672 = vmax.xlane.f32.xlu2 %v629_v21 }
 0x1be   : > { %v631_v22 = vpop.f32.mrf.mxu2 }
 0x1bf   : > { %v1448_v23 = vadd.f32 %v1167_v11, %v631_v22 }
 0x1c1   : > { %674 = vmax.xlane.f32.xlu2 %v1448_v23 }
 0x1c6   : > { %v634_v24 = vpop.f32.mrf.mxu2 }
 0x1c7   : > { %v1451_v26 = vadd.f32 %v1167_v11, %v634_v24 }
 0x1c9   : > { %676 = vmax.xlane.f32.xlu0 %v1451_v26 }
 0x1ce   : > { %v637_v27 = vpop.f32.mrf.mxu2 }
 0x1cf   : > { %v1454_v28 = vadd.f32 %v1167_v11, %v637_v27 }
 0x1d1   : > { %678 = vmax.xlane.f32.xlu1 %v1454_v28 }
 0x1d6   : > { %v640_v29 = vpop.f32.mrf.mxu2 }
 0x1d7   : > { %v1457_v30 = vadd.f32 %v1167_v11, %v640_v29 }
 0x1d9   : > { %680 = vmax.xlane.f32.xlu2 %v1457_v30 }
 0x1de   : > { %v643_v31 = vpop.f32.mrf.mxu2 }
 0x1df   : > { %v1460_v32 = vadd.f32 %v1167_v11, %v643_v31 }
 0x1e1   : > { %682 = vmax.xlane.f32.xlu0 %v1460_v32 }
 0x1e6   : > { %v646_v33 = vpop.f32.mrf.mxu3 }
 0x1e7   : > { %v1463_v34 = vadd.f32 %v1167_v11, %v646_v33 }
 0x1e9   : > { %684 = vmax.xlane.f32.xlu1 %v1463_v34 }
 0x1ee   : > { %v649_v35 = vpop.f32.mrf.mxu3 }
 0x1ef   : > { %v1466_v36 = vadd.f32 %v1167_v11, %v649_v35 }
 0x1f1   : > { %686 = vmax.xlane.f32.xlu2 %v1466_v36 }
 0x1fc   : > { %v652_v25 = vpop.f32.mrf.mxu3 }
 0x1fd   : > { %v1469_v37 = vadd.f32 %v1167_v11, %v652_v25 }
 0x1ff   : > { %688 = vmax.xlane.f32.xlu0 %v1469_v37 }
 0x204   : > { %v655_v38 = vpop.f32.mrf.mxu3 }
 0x205   : > { %v1472_v39 = vadd.f32 %v1167_v11, %v655_v38 }
 0x207   : > { %690 = vmax.xlane.f32.xlu1 %v1472_v39 }
 0x20c   : > { %v658_v40 = vpop.f32.mrf.mxu3  ;;  %v665_v41 = vpop.xlane.xlu0 %664 }
 0x20d   : > { %v1475_v42 = vadd.f32 %v1167_v11, %v658_v40  ;;  %v696_v43 = vsub.f32 %v617_v13, %v665_v41 }
 0x20f   : > { %v712_v44 = vmul.f32 1.442695, %v696_v43  ;;  %692 = vmax.xlane.f32.xlu2 %v1475_v42 }
 0x211   : > { %1168 = vpow2.f32 %v712_v44 }
 0x214   : > { %v661_v45 = vpop.f32.mrf.mxu3  ;;  %v667_v46 = vpop.xlane.xlu0 %666 }
 0x215   : > { %v1478_v47 = vadd.f32 %v1167_v11, %v661_v45  ;;  %v697_v48 = vsub.f32 %v620_v15, %v667_v46 }
 0x217   : > { %v1480_v49 = vpop.eup %1168  ;;  %v714_v50 = vmul.f32 1.442695, %v697_v48  ;;  %694 = vmax.xlane.f32.xlu0 %v1478_v47 }
 0x218   : > { %744 = vadd.xlane.f32.xlu1 %v1480_v49 }
 0x219   : > { %1170 = vpow2.f32 %v714_v50 }
 0x21c   : > { %v669_v51 = vpop.xlane.xlu1 %668 }
 0x21d   : > { %v698_v52 = vsub.f32 %v623_v17, %v669_v51 }
 0x21f   : > { %v1484_v53 = vpop.eup %1170  ;;  %v716_v54 = vmul.f32 1.442695, %v698_v52 }
 0x220   : > { %746 = vadd.xlane.f32.xlu2 %v1484_v53 }
 0x221   : > { %1172 = vpow2.f32 %v716_v54 }
 0x224   : > { %v671_v55 = vpop.xlane.xlu1 %670 }
 0x225   : > { %v699_v56 = vsub.f32 %v626_v19, %v671_v55 }
 0x227   : > { %v1487_v57 = vpop.eup %1172  ;;  %v718_v58 = vmul.f32 1.442695, %v699_v56 }
 0x228   : > { %748 = vadd.xlane.f32.xlu0 %v1487_v57 }
 0x229   : > { %1174 = vpow2.f32 %v718_v58 }
 0x22c   : > { %v673_v59 = vpop.xlane.xlu2 %672 }
 0x22d   : > { %v700_v60 = vsub.f32 %v629_v21, %v673_v59 }
 0x22f   : > { %v1490_v61 = vpop.eup %1174  ;;  %v720_v62 = vmul.f32 1.442695, %v700_v60 }
 0x230   : > { %750 = vadd.xlane.f32.xlu1 %v1490_v61 }
 0x231   : > { %1176 = vpow2.f32 %v720_v62 }
 0x234   : > { %v675_v63 = vpop.xlane.xlu2 %674 }
 0x235   : > { %v701_v0 = vsub.f32 %v1448_v23, %v675_v63 }
 0x237   : > { %v1494_v1 = vpop.eup %1176  ;;  %v722_v2 = vmul.f32 1.442695, %v701_v0 }
 0x238   : > { %752 = vadd.xlane.f32.xlu2 %v1494_v1 }
 0x239   : > { %1178 = vpow2.f32 %v722_v2 }
 0x23c   : > { %v677_v3 = vpop.xlane.xlu0 %676 }
 0x23d   : > { %v702_v4 = vsub.f32 %v1451_v26, %v677_v3 }
 0x23f   : > { %v1498_v5 = vpop.eup %1178  ;;  %v724_v6 = vmul.f32 1.442695, %v702_v4 }
 0x240   : > { %754 = vadd.xlane.f32.xlu0 %v1498_v5 }
 0x241   : > { %1180 = vpow2.f32 %v724_v6 }
 0x244   : > { %v679_v7 = vpop.xlane.xlu1 %678 }
 0x245   : > { %v703_v8 = vsub.f32 %v1454_v28, %v679_v7 }
 0x247   : > { %v1502_v9 = vpop.eup %1180  ;;  %v726_v10 = vmul.f32 1.442695, %v703_v8 }
 0x248   : > { %756 = vadd.xlane.f32.xlu1 %v1502_v9 }
 0x249   : > { %1182 = vpow2.f32 %v726_v10 }
 0x24c   : > { %v681_v11 = vpop.xlane.xlu2 %680 }
 0x24d   : > { %v704_v12 = vsub.f32 %v1457_v30, %v681_v11 }
 0x24f   : > { %v1506_v13 = vpop.eup %1182  ;;  %v728_v14 = vmul.f32 1.442695, %v704_v12 }
 0x250   : > { %758 = vadd.xlane.f32.xlu2 %v1506_v13 }
 0x251   : > { %1184 = vpow2.f32 %v728_v14 }
 0x254   : > { %v683_v15 = vpop.xlane.xlu0 %682 }
 0x255   : > { %v705_v16 = vsub.f32 %v1460_v32, %v683_v15 }
 0x257   : > { %v1510_v17 = vpop.eup %1184  ;;  %v730_v18 = vmul.f32 1.442695, %v705_v16 }
 0x258   : > { %760 = vadd.xlane.f32.xlu0 %v1510_v17 }
 0x259   : > { %1186 = vpow2.f32 %v730_v18 }
 0x25c   : > { %v685_v19 = vpop.xlane.xlu1 %684 }
 0x25d   : > { %v706_v20 = vsub.f32 %v1463_v34, %v685_v19 }
 0x25f   : > { %v1514_v21 = vpop.eup %1186  ;;  %v732_v22 = vmul.f32 1.442695, %v706_v20 }
 0x260   : > { %762 = vadd.xlane.f32.xlu1 %v1514_v21 }
 0x261   : > { %1188 = vpow2.f32 %v732_v22 }
 0x264   : > { %v687_v23 = vpop.xlane.xlu2 %686 }
 0x265   : > { %v707_v24 = vsub.f32 %v1466_v36, %v687_v23 }
 0x267   : > { %v1518_v26 = vpop.eup %1188  ;;  %v734_v27 = vmul.f32 1.442695, %v707_v24 }
 0x268   : > { %764 = vadd.xlane.f32.xlu2 %v1518_v26 }
 0x269   : > { %1190 = vpow2.f32 %v734_v27 }
 0x26f   : > { %v1521_v28 = vpop.eup %1190 }
 0x270   : > { %766 = vadd.xlane.f32.xlu0 %v1521_v28 }
 0x272   : > { %v689_v29 = vpop.xlane.xlu0 %688 }
 0x273   : > { %v708_v30 = vsub.f32 %v1469_v37, %v689_v29 }
 0x275   : > { %v736_v31 = vmul.f32 1.442695, %v708_v30 }
 0x277   : > { %1192 = vpow2.f32 %v736_v31 }
 0x27a   : > { %v691_v32 = vpop.xlane.xlu1 %690 }
 0x27b   : > { %v709_v33 = vsub.f32 %v1472_v39, %v691_v32 }
 0x27d   : > { %v1526_v34 = vpop.eup %1192  ;;  %v738_v35 = vmul.f32 1.442695, %v709_v33 }
 0x27e   : > { %768 = vadd.xlane.f32.xlu1 %v1526_v34 }
 0x27f   : > { %1194 = vpow2.f32 %v738_v35 }
 0x282   : > { %v693_v36 = vpop.xlane.xlu2 %692 }
 0x283   : > { %v710_v25 = vsub.f32 %v1475_v42, %v693_v36 }
 0x285   : > { %v1530_v38 = vpop.eup %1194  ;;  %v740_v40 = vmul.f32 1.442695, %v710_v25 }
 0x286   : > { %770 = vadd.xlane.f32.xlu2 %v1530_v38 }
 0x287   : > { %1196 = vpow2.f32 %v740_v40 }
 0x28a   : > { %v695_v37 = vpop.xlane.xlu0 %694 }
 0x28b   : > { %v711_v41 = vsub.f32 %v1478_v47, %v695_v37  ;;  %v745_v43 = vpop.xlane.xlu1 %744 }
 0x28c   : > { %1198 = vrcp.f32 %v745_v43  ;;  %v787_v51 = vand.u32 2147483648, %v745_v43  ;;  %v785_v52 = vand.u32 2147483647, %v745_v43  ;;  %vm781_vm4 = vweird.f32 %v745_v43 }
 0x28d   : > { %v1534_v39 = vpop.eup %1196  ;;  %v742_v44 = vmul.f32 1.442695, %v711_v41 }
 0x28e   : > { %772 = vadd.xlane.f32.xlu0 %v1534_v39  ;;  %v788_v56 = vor.u32 1.1754944e-38, %v787_v51  ;;  %vm786_vm6 = vcmp.eq.f32.partialorder %v785_v52, 8.507059e+37 }
 0x28f   : > { %1200 = vpow2.f32 %v742_v44 }
 0x292   : > { %v1199_v45 = vpop.eup %1198 }
 0x293   : > { %v777_v46 = vmul.f32 %v1199_v45, %v745_v43  ;;  %v747_v42 = vpop.xlane.xlu2 %746  ;;  %vm782_vm3 = vweird.f32 %v1199_v45 }
 0x294   : > { %1202 = vrcp.f32 %v747_v42  ;;  %vm783_vm5 = vmor %vm781_vm4, %vm782_vm3  ;;  %v802_v2 = vand.u32 2147483648, %v747_v42  ;;  %v800_v4 = vand.u32 2147483647, %v747_v42  ;;  %vm796_vm8 = vweird.f32 %v747_v42 }
 0x295   : > { %v1537_v48 = vpop.eup %1200  ;;  %v778_v50 = vsub.f32 1.0, %v777_v46 }
 0x296   : > { %774 = vadd.xlane.f32.xlu1 %v1537_v48  ;;  %v803_v8 = vor.u32 1.1754944e-38, %v802_v2  ;;  %vm801_vm10 = vcmp.eq.f32.partialorder %v800_v4, 8.507059e+37 }
 0x297   : > { %v779_v47 = vmul.f32 %v1199_v45, %v778_v50 }
 0x299   : > { %v780_v54 = vadd.f32 %v1199_v45, %v779_v47 }
 0x29a   : > { %v1203_v55 = vpop.eup %1202 }
 0x29b   : > { %v784_v58 = vsel %vm783_vm5, %v1199_v45, %v780_v54  ;;  %v792_v59 = vmul.f32 %v1203_v55, %v747_v42  ;;  %v749_v60 = vpop.xlane.xlu0 %748  ;;  %vm797_vm7 = vweird.f32 %v1203_v55 }
 0x29c   : > { %v789_v62 = vsel %vm786_vm6, %v788_v56, %v784_v58  ;;  %1204 = vrcp.f32 %v749_v60  ;;  %vm798_vm9 = vmor %vm796_vm8, %vm797_vm7  ;;  %v817_v16 = vand.u32 2147483648, %v749_v60  ;;  %v815_v19 = vand.u32 2147483647, %v749_v60 }
 0x29d   : > { %v790_v63 = vmul.f32 %v1480_v49, %v789_v62  ;;  %v793_v0 = vsub.f32 1.0, %v792_v59  ;;  %vm811_vm12 = vweird.f32 %v749_v60 }
 0x29e   : > { %v818_v23 = vor.u32 1.1754944e-38, %v817_v16  ;;  %vm816_vm14 = vcmp.eq.f32.partialorder %v815_v19, 8.507059e+37 }
 0x29f   : > { %1016 = vst [vmem:[%s1545_s27] sm:$0xff] %v790_v63  ;;  %v794_v3 = vmul.f32 %v1203_v55, %v793_v0 }
 0x2a1   : > { %v795_v6 = vadd.f32 %v1203_v55, %v794_v3 }
 0x2a2   : > { %v1205_v7 = vpop.eup %1204 }
 0x2a3   : > { %v799_v10 = vsel %vm798_vm9, %v1203_v55, %v795_v6  ;;  %v807_v11 = vmul.f32 %v1205_v7, %v749_v60  ;;  %v751_v12 = vpop.xlane.xlu1 %750  ;;  %vm812_vm11 = vweird.f32 %v1205_v7 }
 0x2a4   : > { %v804_v14 = vsel %vm801_vm10, %v803_v8, %v799_v10  ;;  %1206 = vrcp.f32 %v751_v12  ;;  %vm813_vm13 = vmor %vm811_vm12, %vm812_vm11  ;;  %v832_v32 = vand.u32 2147483648, %v751_v12  ;;  %v830_v35 = vand.u32 2147483647, %v751_v12 }
 0x2a5   : > { %v805_v49 = vmul.f32 %v1484_v53, %v804_v14  ;;  %v808_v15 = vsub.f32 1.0, %v807_v11  ;;  %vm826_vm0 = vweird.f32 %v751_v12 }
 0x2a6   : > { %v833_v40 = vor.u32 1.1754944e-38, %v832_v32  ;;  %vm831_vm2 = vcmp.eq.f32.partialorder %v830_v35, 8.507059e+37 }
 0x2a7   : > { %1017 = vst [vmem:[%s1545_s27 + $0x8] sm:$0xff] %v805_v49  ;;  %v809_v18 = vmul.f32 %v1205_v7, %v808_v15 }
 0x2a9   : > { %v810_v20 = vadd.f32 %v1205_v7, %v809_v18 }
 0x2aa   : > { %v1207_v22 = vpop.eup %1206 }
 0x2ab   : > { %v814_v24 = vsel %vm813_vm13, %v1205_v7, %v810_v20  ;;  %v822_v27 = vmul.f32 %v1207_v22, %v751_v12  ;;  %v753_v29 = vpop.xlane.xlu2 %752  ;;  %vm827_vm15 = vweird.f32 %v1207_v22 }
 0x2ac   : > { %v819_v30 = vsel %vm816_vm14, %v818_v23, %v814_v24  ;;  %1208 = vrcp.f32 %v753_v29  ;;  %vm828_vm1 = vmor %vm826_vm0, %vm827_vm15  ;;  %v847_v46 = vand.u32 2147483648, %v753_v29  ;;  %v845_v50 = vand.u32 2147483647, %v753_v29 }
 0x2ad   : > { %v820_v53 = vmul.f32 %v1487_v57, %v819_v30  ;;  %v823_v31 = vsub.f32 1.0, %v822_v27  ;;  %vm841_vm4 = vweird.f32 %v753_v29 }
 0x2ae   : > { %v848_v52 = vor.u32 1.1754944e-38, %v847_v46  ;;  %vm846_vm6 = vcmp.eq.f32.partialorder %v845_v50, 8.507059e+37 }
 0x2af   : > { %1018 = vst [vmem:[%s1545_s27 + $0x10] sm:$0xff] %v820_v53  ;;  %v824_v33 = vmul.f32 %v1207_v22, %v823_v31 }
 0x2b1   : > { %v825_v36 = vadd.f32 %v1207_v22, %v824_v33 }
 0x2b2   : > { %v1209_v25 = vpop.eup %1208 }
 0x2b3   : > { %v829_v37 = vsel %vm828_vm1, %v1207_v22, %v825_v36  ;;  %v837_v41 = vmul.f32 %v1209_v25, %v753_v29  ;;  %v755_v43 = vpop.xlane.xlu0 %754  ;;  %vm842_vm3 = vweird.f32 %v1209_v25 }
 0x2b4   : > { %v834_v44 = vsel %vm831_vm2, %v833_v40, %v829_v37  ;;  %1210 = vrcp.f32 %v755_v43  ;;  %vm843_vm5 = vmor %vm841_vm4, %vm842_vm3  ;;  %v862_v60 = vand.u32 2147483648, %v755_v43  ;;  %v860_v63 = vand.u32 2147483647, %v755_v43 }
 0x2b5   : > { %v835_v57 = vmul.f32 %v1490_v61, %v834_v44  ;;  %v838_v45 = vsub.f32 1.0, %v837_v41  ;;  %vm856_vm8 = vweird.f32 %v755_v43 }
 0x2b6   : > { %v863_v3 = vor.u32 1.1754944e-38, %v862_v60  ;;  %vm861_vm10 = vcmp.eq.f32.partialorder %v860_v63, 8.507059e+37 }
 0x2b7   : > { %1019 = vst [vmem:[%s1545_s27 + $0x18] sm:$0xff] %v835_v57  ;;  %v839_v42 = vmul.f32 %v1209_v25, %v838_v45 }
 0x2b9   : > { %v840_v51 = vadd.f32 %v1209_v25, %v839_v42 }
 0x2ba   : > { %v1211_v47 = vpop.eup %1210 }
 0x2bb   : > { %v844_v54 = vsel %vm843_vm5, %v1209_v25, %v840_v51  ;;  %v852_v55 = vmul.f32 %v1211_v47, %v755_v43  ;;  %v757_v56 = vpop.xlane.xlu1 %756  ;;  %vm857_vm7 = vweird.f32 %v1211_v47 }
 0x2bc   : > { %v849_v58 = vsel %vm846_vm6, %v848_v52, %v844_v54  ;;  %1212 = vrcp.f32 %v757_v56  ;;  %vm858_vm9 = vmor %vm856_vm8, %vm857_vm7  ;;  %v877_v11 = vand.u32 2147483648, %v757_v56  ;;  %v875_v14 = vand.u32 2147483647, %v757_v56 }
 0x2bd   : > { %v850_v61 = vmul.f32 %v1494_v1, %v849_v58  ;;  %v853_v59 = vsub.f32 1.0, %v852_v55  ;;  %vm871_vm12 = vweird.f32 %v757_v56 }
 0x2be   : > { %v878_v16 = vor.u32 1.1754944e-38, %v877_v11  ;;  %vm876_vm14 = vcmp.eq.f32.partialorder %v875_v14, 8.507059e+37 }
 0x2bf   : > { %1020 = vst [vmem:[%s1545_s27 + $0x20] sm:$0xff] %v850_v61  ;;  %v854_v62 = vmul.f32 %v1211_v47, %v853_v59 }
 0x2c1   : > { %v855_v0 = vadd.f32 %v1211_v47, %v854_v62 }
 0x2c2   : > { %v1213_v2 = vpop.eup %1212 }
 0x2c3   : > { %v859_v4 = vsel %vm858_vm9, %v1211_v47, %v855_v0  ;;  %v867_v6 = vmul.f32 %v1213_v2, %v757_v56  ;;  %v759_v7 = vpop.xlane.xlu2 %758  ;;  %vm872_vm11 = vweird.f32 %v1213_v2 }
 0x2c4   : > { %v864_v8 = vsel %vm861_vm10, %v863_v3, %v859_v4  ;;  %1214 = vrcp.f32 %v759_v7  ;;  %vm873_vm13 = vmor %vm871_vm12, %vm872_vm11  ;;  %v892_v24 = vand.u32 2147483648, %v759_v7  ;;  %v890_v29 = vand.u32 2147483647, %v759_v7 }
 0x2c5   : > { %v865_v1 = vmul.f32 %v1498_v5, %v864_v8  ;;  %v868_v10 = vsub.f32 1.0, %v867_v6  ;;  %vm886_vm0 = vweird.f32 %v759_v7 }
 0x2c6   : > { %v893_v31 = vor.u32 1.1754944e-38, %v892_v24  ;;  %vm891_vm2 = vcmp.eq.f32.partialorder %v890_v29, 8.507059e+37 }
 0x2c7   : > { %1021 = vst [vmem:[%s1545_s27 + $0x28] sm:$0xff] %v865_v1  ;;  %v869_v12 = vmul.f32 %v1213_v2, %v868_v10 }
 0x2c9   : > { %v870_v49 = vadd.f32 %v1213_v2, %v869_v12 }
 0x2ca   : > { %v1215_v15 = vpop.eup %1214 }
 0x2cb   : > { %v874_v18 = vsel %vm873_vm13, %v1213_v2, %v870_v49  ;;  %v882_v19 = vmul.f32 %v1215_v15, %v759_v7  ;;  %v761_v20 = vpop.xlane.xlu0 %760  ;;  %vm887_vm15 = vweird.f32 %v1215_v15 }
 0x2cc   : > { %v879_v22 = vsel %vm876_vm14, %v878_v16, %v874_v18  ;;  %1216 = vrcp.f32 %v761_v20  ;;  %vm888_vm1 = vmor %vm886_vm0, %vm887_vm15  ;;  %v907_v40 = vand.u32 2147483648, %v761_v20  ;;  %v905_v41 = vand.u32 2147483647, %v761_v20 }
 0x2cd   : > { %v880_v5 = vmul.f32 %v1502_v9, %v879_v22  ;;  %v883_v23 = vsub.f32 1.0, %v882_v19  ;;  %vm901_vm4 = vweird.f32 %v761_v20 }
 0x2ce   : > { %v908_v57 = vor.u32 1.1754944e-38, %v907_v40  ;;  %vm906_vm6 = vcmp.eq.f32.partialorder %v905_v41, 8.507059e+37 }
 0x2cf   : > { %1022 = vst [vmem:[%s1545_s27 + $0x30] sm:$0xff] %v880_v5  ;;  %v884_v27 = vmul.f32 %v1215_v15, %v883_v23 }
 0x2d1   : > { %v885_v30 = vadd.f32 %v1215_v15, %v884_v27 }
 0x2d2   : > { %v1217_v53 = vpop.eup %1216 }
 0x2d3   : > { %v889_v32 = vsel %vm888_vm1, %v1215_v15, %v885_v30  ;;  %v897_v33 = vmul.f32 %v1217_v53, %v761_v20  ;;  %v763_v35 = vpop.xlane.xlu1 %762  ;;  %vm902_vm3 = vweird.f32 %v1217_v53 }
 0x2d4   : > { %v894_v36 = vsel %vm891_vm2, %v893_v31, %v889_v32  ;;  %1218 = vrcp.f32 %v763_v35  ;;  %vm903_vm5 = vmor %vm901_vm4, %vm902_vm3  ;;  %v922_v47 = vand.u32 2147483648, %v763_v35  ;;  %v920_v54 = vand.u32 2147483647, %v763_v35 }
 0x2d5   : > { %v895_v9 = vmul.f32 %v1506_v13, %v894_v36  ;;  %v898_v25 = vsub.f32 1.0, %v897_v33  ;;  %vm916_vm8 = vweird.f32 %v763_v35 }
 0x2d6   : > { %v923_v58 = vor.u32 1.1754944e-38, %v922_v47  ;;  %vm921_vm10 = vcmp.eq.f32.partialorder %v920_v54, 8.507059e+37 }
 0x2d7   : > { %1023 = vst [vmem:[%s1545_s27 + $0x38] sm:$0xff] %v895_v9  ;;  %v899_v37 = vmul.f32 %v1217_v53, %v898_v25 }
 0x2d9   : > { %v900_v43 = vadd.f32 %v1217_v53, %v899_v37 }
 0x2da   : > { %v1219_v44 = vpop.eup %1218 }
 0x2db   : > { %v904_v45 = vsel %vm903_vm5, %v1217_v53, %v900_v43  ;;  %v912_v46 = vmul.f32 %v1219_v44, %v763_v35  ;;  %v765_v42 = vpop.xlane.xlu2 %764  ;;  %vm917_vm7 = vweird.f32 %v1219_v44 }
 0x2dc   : > { %v909_v50 = vsel %vm906_vm6, %v908_v57, %v904_v45  ;;  %1220 = vrcp.f32 %v765_v42  ;;  %vm918_vm9 = vmor %vm916_vm8, %vm917_vm7  ;;  %v937_v0 = vand.u32 2147483648, %v765_v42  ;;  %v935_v3 = vand.u32 2147483647, %v765_v42 }
 0x2dd   : > { %v910_v13 = vmul.f32 %v1510_v17, %v909_v50  ;;  %v913_v51 = vsub.f32 1.0, %v912_v46  ;;  %vm931_vm12 = vweird.f32 %v765_v42 }
 0x2de   : > { %v938_v7 = vor.u32 1.1754944e-38, %v937_v0  ;;  %vm936_vm14 = vcmp.eq.f32.partialorder %v935_v3, 8.507059e+37 }
 0x2df   : > { %1024 = vst [vmem:[%s1545_s27 + $0x40] sm:$0xff] %v910_v13  ;;  %v914_v52 = vmul.f32 %v1219_v44, %v913_v51 }
 0x2e1   : > { %v915_v55 = vadd.f32 %v1219_v44, %v914_v52 }
 0x2e2   : > { %v1221_v56 = vpop.eup %1220 }
 0x2e3   : > { %v919_v61 = vsel %vm918_vm9, %v1219_v44, %v915_v55  ;;  %v927_v59 = vmul.f32 %v1221_v56, %v765_v42  ;;  %v767_v60 = vpop.xlane.xlu0 %766  ;;  %vm932_vm11 = vweird.f32 %v1221_v56 }
 0x2e4   : > { %v924_v62 = vsel %vm921_vm10, %v923_v58, %v919_v61  ;;  %1222 = vrcp.f32 %v767_v60  ;;  %vm933_vm13 = vmor %vm931_vm12, %vm932_vm11  ;;  %v950_v49 = vand.u32 2147483647, %v767_v60  ;;  %vm946_vm0 = vweird.f32 %v767_v60 }
 0x2e5   : > { %v925_v17 = vmul.f32 %v1514_v21, %v924_v62  ;;  %v928_v63 = vsub.f32 1.0, %v927_v59  ;;  %v952_v21 = vand.u32 2147483648, %v767_v60 }
 0x2e6   : > { %vm951_vm2 = vcmp.eq.f32.partialorder %v950_v49, 8.507059e+37 }
 0x2e7   : > { %1025 = vst [vmem:[%s1545_s27 + $0x48] sm:$0xff] %v925_v17  ;;  %v929_v2 = vmul.f32 %v1221_v56, %v928_v63  ;;  %v953_v18 = vor.u32 1.1754944e-38, %v952_v21 }
 0x2e9   : > { %v930_v4 = vadd.f32 %v1221_v56, %v929_v2 }
 0x2ea   : > { %v1223_v6 = vpop.eup %1222 }
 0x2eb   : > { %v934_v8 = vsel %vm933_vm13, %v1221_v56, %v930_v4  ;;  %v942_v1 = vmul.f32 %v1223_v6, %v767_v60  ;;  %vm947_vm15 = vweird.f32 %v1223_v6 }
 0x2ec   : > { %v939_v10 = vsel %vm936_vm14, %v938_v7, %v934_v8  ;;  %vm948_vm1 = vmor %vm946_vm0, %vm947_vm15 }
 0x2ed   : > { %v940_v11 = vmul.f32 %v1518_v26, %v939_v10  ;;  %v943_v12 = vsub.f32 1.0, %v942_v1 }
 0x2ef   : > { %1026 = vst [vmem:[%s1545_s27 + $0x50] sm:$0xff] %v940_v11  ;;  %v944_v14 = vmul.f32 %v1223_v6, %v943_v12 }
 0x2f1   : > { %v945_v15 = vadd.f32 %v1223_v6, %v944_v14  ;;  %v769_v16 = vpop.xlane.xlu1 %768 }
 0x2f2   : > { %1224 = vrcp.f32 %v769_v16  ;;  %v967_v27 = vand.u32 2147483648, %v769_v16  ;;  %v965_v30 = vand.u32 2147483647, %v769_v16  ;;  %vm961_vm4 = vweird.f32 %v769_v16 }
 0x2f3   : > { %v949_v19 = vsel %vm948_vm1, %v1223_v6, %v945_v15 }
 0x2f4   : > { %v954_v20 = vsel %vm951_vm2, %v953_v18, %v949_v19  ;;  %v968_v32 = vor.u32 1.1754944e-38, %v967_v27  ;;  %vm966_vm6 = vcmp.eq.f32.partialorder %v965_v30, 8.507059e+37 }
 0x2f5   : > { %v955_v22 = vmul.f32 %v1521_v28, %v954_v20 }
 0x2f7   : > { %1027 = vst [vmem:[%s1545_s27 + $0x58] sm:$0xff] %v955_v22 }
 0x2f8   : > { %v1225_v26 = vpop.eup %1224 }
 0x2f9   : > { %v957_v5 = vmul.f32 %v1225_v26, %v769_v16  ;;  %v771_v23 = vpop.xlane.xlu2 %770  ;;  %vm962_vm3 = vweird.f32 %v1225_v26 }
 0x2fa   : > { %1226 = vrcp.f32 %v771_v23  ;;  %vm963_vm5 = vmor %vm961_vm4, %vm962_vm3  ;;  %v982_v40 = vand.u32 2147483648, %v771_v23  ;;  %v980_v41 = vand.u32 2147483647, %v771_v23  ;;  %vm976_vm8 = vweird.f32 %v771_v23 }
 0x2fb   : > { %v958_v24 = vsub.f32 1.0, %v957_v5 }
 0x2fc   : > { %v983_v57 = vor.u32 1.1754944e-38, %v982_v40  ;;  %vm981_vm10 = vcmp.eq.f32.partialorder %v980_v41, 8.507059e+37 }
 0x2fd   : > { %v959_v29 = vmul.f32 %v1225_v26, %v958_v24 }
 0x2ff   : > { %v960_v53 = vadd.f32 %v1225_v26, %v959_v29 }
 0x300   : > { %v1227_v31 = vpop.eup %1226 }
 0x301   : > { %v964_v33 = vsel %vm963_vm5, %v1225_v26, %v960_v53  ;;  %v972_v35 = vmul.f32 %v1227_v31, %v771_v23  ;;  %v773_v28 = vpop.xlane.xlu0 %772  ;;  %vm977_vm7 = vweird.f32 %v1227_v31 }
 0x302   : > { %v969_v36 = vsel %vm966_vm6, %v968_v32, %v964_v33  ;;  %1228 = vrcp.f32 %v773_v28  ;;  %vm978_vm9 = vmor %vm976_vm8, %vm977_vm7  ;;  %v997_v51 = vand.u32 2147483648, %v773_v28  ;;  %v995_v52 = vand.u32 2147483647, %v773_v28 }
 0x303   : > { %v970_v9 = vmul.f32 %v1526_v34, %v969_v36  ;;  %v973_v25 = vsub.f32 1.0, %v972_v35  ;;  %vm991_vm12 = vweird.f32 %v773_v28 }
 0x304   : > { %v998_v56 = vor.u32 1.1754944e-38, %v997_v51  ;;  %vm996_vm14 = vcmp.eq.f32.partialorder %v995_v52, 8.507059e+37 }
 0x305   : > { %1028 = vst [vmem:[%s1545_s27 + $0x60] sm:$0xff] %v970_v9  ;;  %v974_v37 = vmul.f32 %v1227_v31, %v973_v25 }
 0x307   : > { %v975_v43 = vadd.f32 %v1227_v31, %v974_v37 }
 0x308   : > { %v1229_v44 = vpop.eup %1228 }
 0x309   : > { %v979_v45 = vsel %vm978_vm9, %v1227_v31, %v975_v43  ;;  %v987_v46 = vmul.f32 %v1229_v44, %v773_v28  ;;  %v775_v42 = vpop.xlane.xlu1 %774  ;;  %vm992_vm11 = vweird.f32 %v1229_v44 }
 0x30a   : > { %v984_v50 = vsel %vm981_vm10, %v983_v57, %v979_v45  ;;  %1230 = vrcp.f32 %v775_v42  ;;  %vm993_vm13 = vmor %vm991_vm12, %vm992_vm11  ;;  %v1012_v62 = vand.u32 2147483648, %v775_v42  ;;  %v1010_v63 = vand.u32 2147483647, %v775_v42 }
 0x30b   : > { %v985_v34 = vmul.f32 %v1530_v38, %v984_v50  ;;  %v988_v13 = vsub.f32 1.0, %v987_v46  ;;  %vm1006_vm0 = vweird.f32 %v775_v42 }
 0x30c   : > { %v1013_v2 = vor.u32 1.1754944e-38, %v1012_v62  ;;  %vm1011_vm2 = vcmp.eq.f32.partialorder %v1010_v63, 8.507059e+37 }
 0x30d   : > { %1029 = vst [vmem:[%s1545_s27 + $0x68] sm:$0xff] %v985_v34  ;;  %v989_v47 = vmul.f32 %v1229_v44, %v988_v13 }
 0x30f   : > { %v990_v54 = vadd.f32 %v1229_v44, %v989_v47 }
 0x310   : > { %v1231_v55 = vpop.eup %1230 }
 0x311   : > { %v994_v58 = vsel %vm993_vm13, %v1229_v44, %v990_v54  ;;  %v1002_v61 = vmul.f32 %v1231_v55, %v775_v42  ;;  %vm1007_vm15 = vweird.f32 %v1231_v55 }
 0x312   : > { %v999_v59 = vsel %vm996_vm14, %v998_v56, %v994_v58  ;;  %vm1008_vm1 = vmor %vm1006_vm0, %vm1007_vm15 }
 0x313   : > { %v1000_v60 = vmul.f32 %v1534_v39, %v999_v59  ;;  %v1003_v38 = vsub.f32 1.0, %v1002_v61 }
 0x315   : > { %1030 = vst [vmem:[%s1545_s27 + $0x70] sm:$0xff] %v1000_v60  ;;  %v1004_v17 = vmul.f32 %v1231_v55, %v1003_v38 }
 0x317   : > { %v1005_v0 = vadd.f32 %v1231_v55, %v1004_v17 }
 0x319   : > { %v1009_v3 = vsel %vm1008_vm1, %v1231_v55, %v1005_v0 }
 0x31a   : > { %v1014_v4 = vsel %vm1011_vm2, %v1013_v2, %v1009_v3 }
 0x31b   : > { %v1015_v6 = vmul.f32 %v1537_v48, %v1014_v4 }
 0x31d   : > { %1031 = vst [vmem:[%s1545_s27 + $0x78] sm:$0xff] %v1015_v6 }
 0x31e PF: > { %s17_s24 = sadd.s32 1, %s1238_s24  }
 0x31f   : > { %p14_p4 = scmp.ge.s32.totalorder %s17_s24, 4  }
 0x321   :  { %16 = sbr.rel (!%p14_p4) target bundleno = 1 (0x1), region = 78 }

</bundles_post_ra>
